<compile_context>
chip_gen: v7x
topology: tpu7x:2x2x1
jax: 0.10.0
libtpu: 0.0.40
codegen_flags: <defaults>
</compile_context>

<pallas_src>
import functools

import jax
import jax.numpy as jnp
from jax.experimental import pallas as pl
from jax.experimental.pallas import tpu as pltpu


# ----------------------------- fused Pallas kernel --------------------------

def _gnn_fused_kernel(a_cat_ref, x_blk_ref, w0_ref, b0_ref, w1_ref, b1_ref,
                      o_ref, *, num_classes, mxu_dtype):
    a_cat = a_cat_ref[...]                                     # (N, 2N) = [A | A^T]

    # ---- layer 0: F -> H (aggregate first; both directions in one matmul) ----
    axcat = jnp.dot(a_cat, x_blk_ref[...],
                    preferred_element_type=jnp.float32)        # (N, 2F) = [A@X | A^T@X]
    h = jnp.dot(axcat.astype(mxu_dtype), w0_ref[...],
                preferred_element_type=jnp.float32) + b0_ref[...]
    h = jnp.maximum(h, 0.0)      # ReLU (dropout p=0 -> identity, normalize=False)

    # ---- layer 1: H -> C (project first since H > C; then one aggregation) ----
    p1 = jnp.dot(h.astype(mxu_dtype), w1_ref[...],
                 preferred_element_type=jnp.float32)           # (N, 2C)
    stacked = jnp.concatenate(
        [p1[:, :num_classes], p1[:, num_classes:]], axis=0)    # (2N, C)
    y = jnp.dot(a_cat, stacked.astype(mxu_dtype),
                preferred_element_type=jnp.float32) + b1_ref[...]

    # ---- fused, numerically-stable log_softmax over classes (f32) ----
    m = jnp.max(y, axis=1, keepdims=True)
    s = y - m
    o_ref[...] = s - jnp.log(jnp.sum(jnp.exp(s), axis=1, keepdims=True))


# ------------------------------ wrapper --------------------------------------

def gnn_forward(x, a_norm, params, *, mxu_dtype=jnp.float32):
    """Single grid-less pallas_call for the 2-layer dir-GCN + log_softmax."""
    n, _ = x.shape
    c = params["b1"].shape[1]

    # One-time setup (would be cached alongside adj_norm in the PyTorch module):
    # [A | A^T] and blockdiag(X, X) let each layer's two directional
    # aggregations run as a single MXU matmul inside the kernel.
    a = a_norm.astype(mxu_dtype)
    a_cat = jnp.concatenate([a, a_norm.T.astype(mxu_dtype)], axis=1)     # (N, 2N)
    zeros = jnp.zeros_like(x)
    x_blk = jnp.concatenate(
        [jnp.concatenate([x, zeros], axis=1),
         jnp.concatenate([zeros, x], axis=1)], axis=0).astype(mxu_dtype)  # (2N, 2F)

    kernel = functools.partial(_gnn_fused_kernel, num_classes=c,
                               mxu_dtype=mxu_dtype)
    vmem_spec = pl.BlockSpec(memory_space=pltpu.MemorySpace.VMEM)
    return pl.pallas_call(
        kernel,
        out_shape=jax.ShapeDtypeStruct((n, c), jnp.float32),
        in_specs=[vmem_spec] * 6,
        out_specs=vmem_spec,
    )(a_cat, x_blk,
      params["w0"].astype(mxu_dtype), params["b0"],
      params["w1"].astype(mxu_dtype), params["b1"])


# --------------------------- graph / param setup ----------------------------

def build_normalized_adj(edge_index, num_nodes):
    """Dense equivalent of get_norm_adj(adj, norm='dir'): Dout^-1/2 A Din^-1/2."""
    row, col = edge_index[0], edge_index[1]
    a = jnp.zeros((num_nodes, num_nodes), jnp.float32).at[row, col].set(1.0)
    out_deg = a.sum(axis=1)
    in_deg = a.sum(axis=0)
    out_inv = jnp.where(out_deg > 0, 1.0 / jnp.sqrt(out_deg), 0.0)
    in_inv = jnp.where(in_deg > 0, 1.0 / jnp.sqrt(in_deg), 0.0)
    return out_inv[:, None] * a * in_inv[None, :]


def init_linear(key, fan_in, fan_out):
    # deterministic torch.nn.Linear-style uniform init
    kw, kb = jax.random.split(key)
    bound = 1.0 / jnp.sqrt(jnp.float32(fan_in))
    w = jax.random.uniform(kw, (fan_in, fan_out), jnp.float32, -bound, bound)
    b = jax.random.uniform(kb, (1, fan_out), jnp.float32, -bound, bound)
    return w, b


def fold_alpha_concat(raw, alpha):
    """Fold alpha/(1-alpha) into the weights/biases and fuse the two direction
    branches per layer into single concatenated weight matrices (one-time)."""
    a = jnp.float32(alpha)
    w0 = jnp.concatenate([a * raw["w0_s"], (1.0 - a) * raw["w0_d"]], axis=0)  # (2F, H)
    b0 = a * raw["b0_s"] + (1.0 - a) * raw["b0_d"]                            # (1, H)
    w1 = jnp.concatenate([a * raw["w1_s"], (1.0 - a) * raw["w1_d"]], axis=1)  # (H, 2C)
    b1 = a * raw["b1_s"] + (1.0 - a) * raw["b1_d"]                            # (1, C)
    return dict(w0=w0, b0=b0, w1=w1, b1=b1)


def gnn_reference(x, a_norm, raw, alpha):
    """Plain-JAX reference matching the PyTorch module exactly (unfused)."""
    at_norm = a_norm.T

    def dir_layer(z, ws, bs, wd, bd):
        return (alpha * ((a_norm @ z) @ ws + bs)
                + (1.0 - alpha) * ((at_norm @ z) @ wd + bd))

    h = jax.nn.relu(dir_layer(x, raw["w0_s"], raw["b0_s"],
                              raw["w0_d"], raw["b0_d"]))
    y = dir_layer(h, raw["w1_s"], raw["b1_s"], raw["w1_d"], raw["b1_d"])
    return jax.nn.log_softmax(y, axis=1)


if __name__ == "__main__":
    N = 16            # nodes
    F = 16            # num_features
    H = 32            # hidden_dim
    C = 8             # num_classes
    ALPHA = 0.5       # nn.Parameter(alpha), learn_alpha=False

    key = jax.random.PRNGKey(0)
    kx, k0s, k0d, k1s, k1d = jax.random.split(key, 5)

    # deterministic small directed graph: ring edges + skip-3 edges
    nodes = jnp.arange(N, dtype=jnp.int32)
    row = jnp.concatenate([nodes, nodes])
    col = jnp.concatenate([(nodes + 1) % N, (nodes + 3) % N])
    edge_index = jnp.stack([row, col], axis=0)          # [2, 2N]

    x = jax.random.normal(kx, (N, F), jnp.float32)
    a_norm = build_normalized_adj(edge_index, N)

    w0_s, b0_s = init_linear(k0s, F, H)
    w0_d, b0_d = init_linear(k0d, F, H)
    w1_s, b1_s = init_linear(k1s, H, C)
    w1_d, b1_d = init_linear(k1d, H, C)
    raw = dict(w0_s=w0_s, b0_s=b0_s, w0_d=w0_d, b0_d=b0_d,
               w1_s=w1_s, b1_s=b1_s, w1_d=w1_d, b1_d=b1_d)
    params = fold_alpha_concat(raw, ALPHA)

    # f32 MXU path -> validate tightly against the unfused pure-JAX reference.
    out = jax.block_until_ready(gnn_forward(x, a_norm, params))
    assert out.shape == (N, C)
    # log_softmax rows sum to 1 after exp
    assert bool(jnp.allclose(jnp.exp(out).sum(axis=1), 1.0, atol=1e-4))
    ref = gnn_reference(x, a_norm, raw, ALPHA)
    assert bool(jnp.allclose(out, ref, atol=2e-4, rtol=2e-4))

    # bf16 MXU-operand path (MXU-native rate on v5e/v6e/v7x, f32 accumulation).
    out_bf16 = jax.block_until_ready(
        gnn_forward(x, a_norm, params, mxu_dtype=jnp.bfloat16))
    assert out_bf16.shape == (N, C)
    assert bool(jnp.all(jnp.isfinite(out_bf16)))
    assert bool(jnp.allclose(out_bf16, out, atol=0.2))

    print("KERNEL_OK")
</pallas_src>

<mosaic_0001>
module attributes {stable_mosaic.version = 11 : i64} {
  func.func @_gnn_fused_kernel(%arg0: memref<16x32xf32, #tpu.memory_space<vmem>>, %arg1: memref<32x32xf32, #tpu.memory_space<vmem>>, %arg2: memref<32x32xf32, #tpu.memory_space<vmem>>, %arg3: memref<1x32xf32, #tpu.memory_space<vmem>>, %arg4: memref<32x16xf32, #tpu.memory_space<vmem>>, %arg5: memref<1x8xf32, #tpu.memory_space<vmem>>, %arg6: memref<16x8xf32, #tpu.memory_space<vmem>>) attributes {dimension_semantics = [], scalar_prefetch = 0 : i64, scratch_operands = 0 : i64, tpu.core_type = #tpu.core_type<tc>} {
    %c0 = arith.constant 0 : index
    %c0_0 = arith.constant 0 : index
    %0 = vector.load %arg0[%c0, %c0_0] : memref<16x32xf32, #tpu.memory_space<vmem>>, vector<16x32xf32>
    %c0_1 = arith.constant 0 : index
    %c0_2 = arith.constant 0 : index
    %1 = vector.load %arg1[%c0_1, %c0_2] : memref<32x32xf32, #tpu.memory_space<vmem>>, vector<32x32xf32>
    %cst = arith.constant dense<0.000000e+00> : vector<16x32xf32>
    %2 = tpu.matmul %0, %1, %cst {dimension_numbers = #tpu.dot_dimension_numbers<[1], [0], [0], [1], [0, 0, 1, 1], [], []>} : vector<16x32xf32>, vector<32x32xf32>, vector<16x32xf32> -> vector<16x32xf32>
    %c0_3 = arith.constant 0 : index
    %c0_4 = arith.constant 0 : index
    %3 = vector.load %arg2[%c0_3, %c0_4] : memref<32x32xf32, #tpu.memory_space<vmem>>, vector<32x32xf32>
    %cst_5 = arith.constant dense<0.000000e+00> : vector<16x32xf32>
    %4 = tpu.matmul %2, %3, %cst_5 {dimension_numbers = #tpu.dot_dimension_numbers<[1], [0], [0], [1], [0, 0, 1, 1], [], []>} : vector<16x32xf32>, vector<32x32xf32>, vector<16x32xf32> -> vector<16x32xf32>
    %c0_6 = arith.constant 0 : index
    %c0_7 = arith.constant 0 : index
    %5 = vector.load %arg3[%c0_6, %c0_7] : memref<1x32xf32, #tpu.memory_space<vmem>>, vector<1x32xf32>
    %6 = vector.broadcast %5 : vector<1x32xf32> to vector<16x32xf32>
    %7 = arith.addf %4, %6 : vector<16x32xf32>
    %cst_8 = arith.constant 0.000000e+00 : f32
    %8 = vector.broadcast %cst_8 : f32 to vector<16x32xf32>
    %9 = arith.maximumf %7, %8 : vector<16x32xf32>
    %c0_9 = arith.constant 0 : index
    %c0_10 = arith.constant 0 : index
    %10 = vector.load %arg4[%c0_9, %c0_10] : memref<32x16xf32, #tpu.memory_space<vmem>>, vector<32x16xf32>
    %cst_11 = arith.constant dense<0.000000e+00> : vector<16x16xf32>
    %11 = tpu.matmul %9, %10, %cst_11 {dimension_numbers = #tpu.dot_dimension_numbers<[1], [0], [0], [1], [0, 0, 1, 1], [], []>} : vector<16x32xf32>, vector<32x16xf32>, vector<16x16xf32> -> vector<16x16xf32>
    %12 = vector.extract_strided_slice %11 {offsets = [0, 0], sizes = [16, 8], strides = [1, 1]} : vector<16x16xf32> to vector<16x8xf32>
    %13 = vector.extract_strided_slice %11 {offsets = [0, 8], sizes = [16, 8], strides = [1, 1]} : vector<16x16xf32> to vector<16x8xf32>
    %14 = tpu.concatenate %12, %13 in 0 : vector<16x8xf32>, vector<16x8xf32> -> vector<32x8xf32>
    %cst_12 = arith.constant dense<0.000000e+00> : vector<16x8xf32>
    %15 = tpu.matmul %0, %14, %cst_12 {dimension_numbers = #tpu.dot_dimension_numbers<[1], [0], [0], [1], [0, 0, 1, 1], [], []>} : vector<16x32xf32>, vector<32x8xf32>, vector<16x8xf32> -> vector<16x8xf32>
    %c0_13 = arith.constant 0 : index
    %c0_14 = arith.constant 0 : index
    %16 = vector.load %arg5[%c0_13, %c0_14] : memref<1x8xf32, #tpu.memory_space<vmem>>, vector<1x8xf32>
    %17 = vector.broadcast %16 : vector<1x8xf32> to vector<16x8xf32>
    %18 = arith.addf %15, %17 : vector<16x8xf32>
    %cst_15 = arith.constant dense<0xFF800000> : vector<16xf32>
    %19 = vector.multi_reduction <maximumf>, %18, %cst_15 [1] : vector<16x8xf32> to vector<16xf32>
    %20 = vector.shape_cast %19 : vector<16xf32> to vector<16x1xf32>
    %21 = vector.broadcast %20 : vector<16x1xf32> to vector<16x8xf32>
    %22 = arith.subf %18, %21 : vector<16x8xf32>
    %23 = math.exp %22 : vector<16x8xf32>
    %cst_16 = arith.constant dense<0.000000e+00> : vector<16xf32>
    %24 = vector.multi_reduction <add>, %23, %cst_16 [1] : vector<16x8xf32> to vector<16xf32>
    %25 = vector.shape_cast %24 : vector<16xf32> to vector<16x1xf32>
    %26 = math.log %25 : vector<16x1xf32>
    %27 = vector.broadcast %26 : vector<16x1xf32> to vector<16x8xf32>
    %28 = arith.subf %22, %27 : vector<16x8xf32>
    %c0_17 = arith.constant 0 : index
    %c0_18 = arith.constant 0 : index
    %29 = vector.load %arg6[%c0_17, %c0_18] : memref<16x8xf32, #tpu.memory_space<vmem>>, vector<16x8xf32>
    tpu.vector_store %arg6[%c0_17, %c0_18], %28 {strides = array<i32>} : memref<16x8xf32, #tpu.memory_space<vmem>>, vector<16x8xf32>,
    return
  }
}

</mosaic_0001>

<bundles_post_ra>
// kernel: tpu_custom_call.1
= control target key start
LH: loop header
LB: loop body
LE: loop exit
PB: predicated region body
PF: predicated region fallthrough
CT: control target
= control target key end

     0   :  { %11 = vsyncpa [#allocation3], 0  ;;  %s577_s21 = smov [#allocation2]   ;;  %s684_s0 = inlined_call_operand.vmem [shape: f32[16,32], index: 0, kind: input, shape index: {}]   ;;  %s685_s1 = inlined_call_operand.vmem [shape: f32[32,32], index: 1, kind: input, shape index: {}]   ;;  %s686_s2 = inlined_call_operand.hbm [shape: f32[32,32], index: 2, kind: input, shape index: {}]   ;;  %s687_s3 = inlined_call_operand.vmem [shape: f32[1,32], index: 3, kind: input, shape index: {}]   ;;  %s688_s4 = inlined_call_operand.vmem [shape: f32[32,16], index: 4, kind: input, shape index: {}]   ;;  %s689_s5 = inlined_call_operand.vmem [shape: f32[1,8], index: 5, kind: input, shape index: {}]   ;;  %s690_s6 = inlined_call_operand.vmem [shape: f32[16,8], index: 6, kind: output, shape index: {}]  }
   0x1   :  { %s21_s22 = sshll.u32 %s577_s21, 4  ;;  %s553_s25 = scalar_lea.hbm %s686_s2, 512  ;;  %s22_s22 = int_to_ptr.vmem [resolvable:$true] %s21_s22 }
   0x2   :  { %p554_p0 = scmp.ne.s32.totalorder %s686_s2, %s553_s25  ;;  %p557_p1 = scmp.lt.u32.totalorder %s553_s25, %s686_s2 }
   0x4   :  { %p559_p2 = pnand %p557_p1, %p554_p0 }
   0x6   :  { %562 = shalt.err (!%p559_p2)
}
   0x7   :  { %s563_s30 = scalar_lea.vmem %s22_s22, 512  ;;  %p568_p4 = scmp.lt.s32.totalorder %s22_s22, %s22_s22 }
   0x8   :  { %p564_p3 = scmp.ne.s32.totalorder %s22_s22, %s563_s30  ;;  %p569_p5 = scmp.lt.s32.totalorder %s563_s30, %s563_s30 }
   0xa   :  { %p570_p6 = por %p569_p5, %p568_p4 }
   0xc   :  { %p571_p7 = pnand %p570_p6, %p564_p3 }
   0xe   :  { %574 = shalt.err (!%p571_p7)
}
   0xf   :  { %s578_s7 = smov 128   ;;  %s579_s8 = smov 8  }
  0x10   :  { %27 = dma.hbm_to_vmem [thread:$0]  %s686_s2, 512, %s22_s22, [#allocation3], %s578_s7, %s578_s7, %s579_s8  }
  0x11   :  { %575 = dma.done.wait [#allocation3], 512  }
  0x12   :  { %576 = vsyncadd [#allocation3], 4294966784  ;;  %vm43_vm0 = vcmask 261120   ;;  %v39_v0 = vld [vmem:[%s685_s1] sm:$0xff]  ;;  %v40_v1 = vld [vmem:[%s685_s1 + $0x8] sm:$0xff]  ;;  %vm394_vm1 = vcmask 64512  }
  0x13   :  { %v41_v2 = vld [vmem:[%s685_s1 + $0x10] sm:$0xff]  ;;  %v504_v3 = vpack.c.bf16 %v40_v1, %v39_v0  ;;  %v42_v4 = vld [vmem:[%s685_s1 + $0x18] sm:$0xff]  ;;  %v37_v5 = vld [vmem:[%s684_s0] sm:$0xff] }
  0x14   :  { %v508_v6 = vpack.c.bf16 %v42_v4, %v41_v2  ;;  %468 = vmatprep.mubr.msk.f32.mxu0 %vm43_vm0, %v37_v5  ;;  %v125_v7 = vld [vmem:[#allocation2] sm:$0xff]  ;;  %v126_v8 = vld [vmem:[#allocation2 + $0x8] sm:$0xff]  ;;  %v127_v9 = vld [vmem:[#allocation2 + $0x10] sm:$0xff] }
  0x15   :  { %505 = vmatprep.subr.bf16.mxu0 %v504_v3  ;;  %v512_v10 = vpack.c.bf16 %v126_v8, %v125_v7  ;;  %v128_v11 = vld [vmem:[#allocation2 + $0x18] sm:$0xff]  ;;  %v38_v13 = vld [vmem:[%s684_s0 + $0x8] sm:$0xff]  ;;  %v219_v14 = vld [vmem:[%s688_s4] sm:$0xff] }
  0x16   :  { %507 = vmatpush3.bf16.msra.mxu0 %v504_v3  ;;  %v516_v12 = vpack.c.bf16 %v128_v11, %v127_v9  ;;  %v220_v15 = vld [vmem:[%s688_s4 + $0x8] sm:$0xff]  ;;  %v221_v19 = vld [vmem:[%s688_s4 + $0x10] sm:$0xff]  ;;  %v222_v20 = vld [vmem:[%s688_s4 + $0x18] sm:$0xff]  ;;  %s580_s4 = smov 120  }
  0x17   :  { %509 = vmatprep.subr.bf16.mxu0 %v508_v6  ;;  %513 = vmatprep.subr.bf16.mxu1 %v512_v10  ;;  %v520_v16 = vpack.c.bf16 %v220_v15, %v219_v14  ;;  %v524_v21 = vpack.c.bf16 %v222_v20, %v221_v19  ;;  %v428_v22 = vld [vmem:[%s687_s3] ss:$0 sm:$0xff] }
  0x18   :  { %515 = vmatpush3.bf16.msra.mxu1 %v512_v10  ;;  %v433_v37 = vld [vmem:[%s689_s5] ss:$0 sm:$0xff] }
  0x19   :  { %517 = vmatprep.subr.bf16.mxu1 %v516_v12 }
  0x1a   :  { %511 = vmatpush3.bf16.msra.mxu0 %v508_v6 }
  0x1b   :  { %521 = vmatprep.subr.bf16.mxu0 %v520_v16 }
  0x1c   :  { %519 = vmatpush3.bf16.msra.mxu1 %v516_v12 }
  0x1d   :  { %469 = vmatmul.mubr.msk.f32.vlgmr.msra.gmra.mrb[0].mxu0 %vm43_vm0, %v38_v13 }
  0x1e   :  { %523 = vmatpush3.bf16.msra.mxu0 %v520_v16 }
  0x1f   :  { %525 = vmatprep.subr.bf16.mxu0 %v524_v21 }
  0x22   :  { %527 = vmatpush3.bf16.msra.mxu0 %v524_v21 }
  0xf0   :  { %v470_v17 = vpop.f32.mrb[0].mxu0 }
  0xf1   :  { %v116_v18 = vpop.f32.mrb[1].mxu0 }
  0xf2   :  { %479 = vmatprep.mubr.msk.f32.mxu1 %vm43_vm0, %v116_v18 }
  0xf3   :  { %480 = vmatmul.mubr.msk.f32.vlgmr.msra.gmra.mrb[0].mxu1 %vm43_vm0, %v470_v17 }
  0xf4   :  { %501 = vmatprep.mubr.msk.f32.mxu1 %vm43_vm0, %v37_v5 }
 0x1c6   :  { %v481_v23 = vpop.f32.mrb[0].mxu1 }
 0x1c7   :  { %v214_v24 = vadd.f32 %v481_v23, %v428_v22  ;;  %v208_v25 = vpop.f32.mrb[1].mxu1 }
 0x1c8   :  { %v209_v26 = vadd.f32 %v428_v22, %v208_v25 }
 0x1c9   :  { %v218_v28 = vmax.f32 %v214_v24, 0.0 }
 0x1ca   :  { %v217_v27 = vmax.f32 %v209_v26, 0.0 }
 0x1cc   :  { %490 = vmatprep.mubr.msk.f32.mxu0 %vm43_vm0, %v217_v27 }
 0x1cd   :  { %491 = vmatmul.mubr.msk.f32.vlgmr.msra.gmra.mrb[2].mxu0 %vm43_vm0, %v218_v28 }
 0x2a0   :  { %v492_v29 = vpop.f32.mrb[2].mxu0 }
 0x2a1   :  { %v295_v30 = vpop.f32.mrb[3].mxu0 }
 0x2a2   :  { %v540_v31 = vpack.i.bf16 %v492_v29, %v295_v30  ;;  %v528_v32 = vpack.c.bf16 %v492_v29, %v295_v30 }
 0x2a4   :  { %541 = vrot.lane.b32.xlu0 %v540_v31, %s580_s4  ;;  %529 = vmatprep.subr.bf16.mxu1 %v528_v32 }
 0x2a5   :  { %531 = vmatpush3.bf16.msra.mxu1 %v528_v32 }
 0x316   :  { %v542_v33 = vpop.permute.xlu0 %541 }
 0x317   :  { %v544_v34 = vunpack.i.h.bf16 %v542_v33  ;;  %v543_v35 = vunpack.i.l.bf16 %v542_v33 }
 0x319   :  { %v532_v36 = vpack.c.bf16 %v544_v34, %v543_v35 }
 0x31b   :  { %533 = vmatprep.subr.bf16.mxu1 %v532_v36 }
 0x31c   :  { %535 = vmatpush3.bf16.msra.mxu1 %v532_v36 }
 0x31f   :  { %502 = vmatmul.mubr.msk.f32.vlgmr.msra.gmra.mrb[2].mxu1 %vm43_vm0, %v38_v13 }
 0x3f2   :  { %v503_v38 = vpop.f32.mrb[2].mxu1 }
 0x3f3   :  { %v391_v39 = vadd.f32 %v503_v38, %v433_v37  ;;  %v385_v40 = vpop.f32.mrb[3].mxu1 }
 0x3f4   :  { %v386_v41 = vadd.f32 %v433_v37, %v385_v40 }
 0x3f5   :  { %v398_v42 = vsel %vm394_vm1, %v391_v39, -inf }
 0x3f6   :  { %399 = vmax.xlane.f32.xlu1 %v398_v42  ;;  %v395_v43 = vsel %vm394_vm1, %v386_v41, -inf }
 0x3f7   :  { %396 = vmax.xlane.f32.xlu0 %v395_v43 }
 0x483   :  { %v400_v44 = vpop.xlane.xlu1 %399 }
 0x484   :  { %v402_v45 = vsub.f32 %v391_v39, %v400_v44  ;;  %v397_v46 = vpop.xlane.xlu0 %396 }
 0x485   :  { %v401_v47 = vsub.f32 %v386_v41, %v397_v46 }
 0x486   :  { %v405_v48 = vmul.f32 1.442695, %v402_v45 }
 0x487   :  { %v403_v49 = vmul.f32 1.442695, %v401_v47 }
 0x489   :  { %545 = vpow2.f32 %v403_v49 }
 0x48a   :  { %547 = vpow2.f32 %v405_v48 }
 0x493   :  { %v546_v50 = vpop.eup %545 }
 0x494   :  { %v407_v51 = vsel %vm394_vm1, %v546_v50, 0.0  ;;  %v548_v52 = vpop.eup %547 }
 0x495   :  { %408 = vadd.xlane.f32.xlu1 %v407_v51  ;;  %v410_v53 = vsel %vm394_vm1, %v548_v52, 0.0 }
 0x499   :  { %411 = vadd.xlane.f32.xlu1 %v410_v53 }
 0x522   :  { %v409_v54 = vpop.xlane.xlu1 %408 }
 0x523   :  { %549 = vlog2.f32 %v409_v54 }
 0x526   :  { %v412_v55 = vpop.xlane.xlu1 %411 }
 0x527   :  { %551 = vlog2.f32 %v412_v55 }
 0x52d   :  { %v550_v56 = vpop.eup %549 }
 0x52e   :  { %v414_v57 = vmul.f32 0.6931472, %v550_v56 }
 0x530   :  { %v417_v58 = vsub.f32 %v401_v47, %v414_v57 }
 0x531   :  { %v552_v59 = vpop.eup %551 }
 0x532   :  { %419 = vst.msk [vmem:[%s690_s6] sm:$0xff] %vm394_vm1, %v417_v58  ;;  %v416_v60 = vmul.f32 0.6931472, %v552_v59 }
 0x534   :  { %v418_v61 = vsub.f32 %v402_v45, %v416_v60 }
 0x536   :  { %420 = vst.msk [vmem:[%s690_s6 + $0x8] sm:$0xff] %vm394_vm1, %v418_v61 }
 0x537   :  { %425 = vsyncpa [#allocation3], 1 }

</bundles_post_ra>
